<compile_context>
chip_gen: v5e
topology: v5e:2x2
jax: 0.10.0
libtpu: 0.0.40
codegen_flags: <defaults>
</compile_context>

<pallas_src>
import math

import jax
import jax.numpy as jnp
from jax import lax
from jax.experimental import pallas as pl
from jax.experimental.pallas import tpu as pltpu


def make_attention_kernel(num_heads, head_size):
    scale = 1.0 / math.sqrt(head_size)

    def kernel(q_in_ref, k_in_ref, wq_ref, bq_ref, wk_ref, bk_ref,
               wv_ref, bv_ref, out_ref):
        # One (batch, q-tile) grid point.  Blocks: q_in (1, tq, H), k_in (1, Sk, H).
        q_in = q_in_ref[0].astype(jnp.bfloat16)   # single cast of the q tile
        k_in = k_in_ref[0].astype(jnp.bfloat16)   # single cast of the k/v source

        # Q/K/V projections on the MXU: bf16 operands, f32 accumulation.
        # The 1/sqrt(D) scale is folded into Q once (hoisted out of head work).
        q = (jnp.dot(q_in, wq_ref[...], preferred_element_type=jnp.float32)
             + bq_ref[0]) * scale                                  # (tq, all_head) f32
        k = jnp.dot(k_in, wk_ref[...],
                    preferred_element_type=jnp.float32) + bk_ref[0]  # (Sk, all_head)
        v = jnp.dot(k_in, wv_ref[...],
                    preferred_element_type=jnp.float32) + bv_ref[0]  # (Sk, all_head)

        # Head-batched (num_heads, S, D) operands; one bf16 cast per tensor.
        def split_heads(x):
            parts = [x[:, h * head_size:(h + 1) * head_size]
                     for h in range(num_heads)]
            return jnp.stack(parts, axis=0).astype(jnp.bfloat16)

        qh = split_heads(q)   # (Hh, tq, D)
        kh = split_heads(k)   # (Hh, Sk, D)
        vh = split_heads(v)   # (Hh, Sk, D)

        # Scores for all heads with one batched NT contraction (contract last
        # dims; no materialized transpose of K).
        scores = lax.dot_general(
            qh, kh, (((2,), (2,)), ((0,), (0,))),
            preferred_element_type=jnp.float32)                    # (Hh, tq, Sk) f32

        # Numerically-stable softmax in f32; approx reciprocal -> EUP slot.
        m = jnp.max(scores, axis=-1, keepdims=True)
        e = jnp.exp(scores - m)
        probs = e * pl.reciprocal(jnp.sum(e, axis=-1, keepdims=True), approx=True)

        # probs @ V, batched over heads; bf16 operands, f32 accumulation.
        ctx = lax.dot_general(
            probs.astype(jnp.bfloat16), vh, (((2,), (1,)), ((0,), (0,))),
            preferred_element_type=jnp.float32)                    # (Hh, tq, D)

        # Re-concat heads and do ONE full-width, lane-dense store.
        ctx_all = jnp.concatenate([ctx[h] for h in range(num_heads)], axis=-1)
        out_ref[0] = ctx_all.astype(out_ref.dtype)

    return kernel


def _pick_q_tile(seq_len, target=256):
    """Largest nice q-tile: full sequence if small, else a /8 divisor."""
    if seq_len <= target:
        return seq_len
    for t in (target, 128, 64, 32, 16, 8):
        if seq_len % t == 0:
            return t
    return seq_len


def my_attention(hidden_q, hidden_k, params, *, num_heads, head_size):
    """hidden_q: (B, Sq, H), hidden_k: (B, Sk, H). Returns (B, Sq, all_head)."""
    B, Sq, H = hidden_q.shape
    _, Sk, _ = hidden_k.shape
    all_head = num_heads * head_size
    wq, bq, wk, bk, wv, bv = params   # w*: (H, all_head); b*: (1, all_head)

    # MXU operands in bf16 (accumulation stays f32 inside the kernel); biases f32.
    wq_b = wq.astype(jnp.bfloat16)
    wk_b = wk.astype(jnp.bfloat16)
    wv_b = wv.astype(jnp.bfloat16)

    tq = _pick_q_tile(Sq)
    grid = (B, Sq // tq)

    kernel = make_attention_kernel(num_heads, head_size)

    # Grid-invariant parameter blocks (index map constant across the grid).
    w_spec = pl.BlockSpec((H, all_head), lambda b, i: (0, 0))
    b_spec = pl.BlockSpec((1, all_head), lambda b, i: (0, 0))

    # Advisory cost estimate for XLA scheduling around the custom call.
    proj_flops = 2 * B * (Sq + 2 * Sk) * H * all_head
    attn_flops = 4 * B * num_heads * Sq * Sk * head_size
    bytes_accessed = (
        hidden_q.size * hidden_q.dtype.itemsize
        + hidden_k.size * hidden_k.dtype.itemsize
        + 3 * (H * all_head * 2 + all_head * 4)          # bf16 weights + f32 biases
        + B * Sq * all_head * hidden_q.dtype.itemsize)   # output

    return pl.pallas_call(
        kernel,
        out_shape=jax.ShapeDtypeStruct((B, Sq, all_head), hidden_q.dtype),
        grid_spec=pltpu.PrefetchScalarGridSpec(
            num_scalar_prefetch=0,
            grid=grid,
            in_specs=[
                pl.BlockSpec((1, tq, H), lambda b, i: (b, i, 0)),
                pl.BlockSpec((1, Sk, H), lambda b, i: (b, 0, 0)),
                w_spec, b_spec, w_spec, b_spec, w_spec, b_spec,
            ],
            out_specs=pl.BlockSpec((1, tq, all_head), lambda b, i: (b, i, 0)),
        ),
        compiler_params=pltpu.CompilerParams(
            dimension_semantics=("parallel", "parallel"),
            vmem_limit_bytes=32 * 1024 * 1024,
        ),
        cost_estimate=pl.CostEstimate(
            flops=proj_flops + attn_flops,
            transcendentals=B * num_heads * Sq * Sk,
            bytes_accessed=bytes_accessed),
    )(hidden_q, hidden_k, wq_b, bq, wk_b, bk, wv_b, bv)


def reference_attention(hidden_q, hidden_k, params, *, num_heads, head_size):
    """Pure-JAX f32 reference mirroring the PyTorch forward."""
    wq, bq, wk, bk, wv, bv = params
    B, Sq, _ = hidden_q.shape
    _, Sk, _ = hidden_k.shape

    def proj(x, w, b):
        return x @ w + b[0]

    def split_heads(x, S):
        return x.reshape(B, S, num_heads, head_size).transpose(0, 2, 1, 3)

    q = split_heads(proj(hidden_q, wq, bq), Sq)
    k = split_heads(proj(hidden_k, wk, bk), Sk)
    v = split_heads(proj(hidden_k, wv, bv), Sk)
    scores = jnp.einsum("bhqd,bhkd->bhqk", q / math.sqrt(head_size), k)
    probs = jax.nn.softmax(scores, axis=-1)
    ctx = jnp.einsum("bhqk,bhkd->bhqd", probs, v)
    return ctx.transpose(0, 2, 1, 3).reshape(B, Sq, num_heads * head_size)


if __name__ == "__main__":
    # Small shapes consistent with the module.
    B, Sq, Sk = 2, 8, 8
    hidden_size = 32
    num_heads = 2
    head_size = hidden_size // num_heads     # attention_head_size default
    all_head = num_heads * head_size

    key = jax.random.PRNGKey(0)
    k1, k2, k3, k4, k5, k6, k7, k8 = jax.random.split(key, 8)

    hidden_q = jax.random.normal(k1, (B, Sq, hidden_size), dtype=jnp.float32)
    hidden_k = jax.random.normal(k2, (B, Sk, hidden_size), dtype=jnp.float32)

    # Deterministic synthetic parameters (nn.Linear weights, pre-transposed).
    init = 0.02
    wq = init * jax.random.normal(k3, (hidden_size, all_head), dtype=jnp.float32)
    wk = init * jax.random.normal(k4, (hidden_size, all_head), dtype=jnp.float32)
    wv = init * jax.random.normal(k5, (hidden_size, all_head), dtype=jnp.float32)
    bq = init * jax.random.normal(k6, (1, all_head), dtype=jnp.float32)
    bk = init * jax.random.normal(k7, (1, all_head), dtype=jnp.float32)
    bv = init * jax.random.normal(k8, (1, all_head), dtype=jnp.float32)
    params = (wq, bq, wk, bk, wv, bv)

    out = my_attention(hidden_q, hidden_k, params,
                       num_heads=num_heads, head_size=head_size)
    out = jax.block_until_ready(out)

    ref = reference_attention(hidden_q, hidden_k, params,
                              num_heads=num_heads, head_size=head_size)
    assert out.shape == (B, Sq, all_head)
    # bf16 MXU operands + approx reciprocal loosen the tolerance vs f32 ref.
    assert jnp.allclose(out, ref, atol=2e-2, rtol=2e-2), "mismatch vs reference"

    print("KERNEL_OK")
</pallas_src>

<mosaic_0001>
module attributes {stable_mosaic.version = 11 : i64} {
  func.func @kernel(%arg0: i32, %arg1: i32, %arg2: memref<1x8x32xf32, #tpu.memory_space<vmem>>, %arg3: memref<1x8x32xf32, #tpu.memory_space<vmem>>, %arg4: memref<32x32xbf16, #tpu.memory_space<vmem>>, %arg5: memref<1x32xf32, #tpu.memory_space<vmem>>, %arg6: memref<32x32xbf16, #tpu.memory_space<vmem>>, %arg7: memref<1x32xf32, #tpu.memory_space<vmem>>, %arg8: memref<32x32xbf16, #tpu.memory_space<vmem>>, %arg9: memref<1x32xf32, #tpu.memory_space<vmem>>, %arg10: memref<1x8x32xf32, #tpu.memory_space<vmem>>) attributes {dimension_semantics = [#tpu.dimension_semantics<parallel>, #tpu.dimension_semantics<parallel>], iteration_bounds = array<i64: 2, 1>, scalar_prefetch = 0 : i64, scratch_operands = 0 : i64, tpu.core_type = #tpu.core_type<tc>, window_params = [{transform_indices = @transform_0, window_bounds = array<i64: 1, 8, 32>}, {transform_indices = @transform_1, window_bounds = array<i64: 1, 8, 32>}, {pipeline_mode = #tpu.pipeline_mode<synchronous>, transform_indices = @transform_2, window_bounds = array<i64: 32, 32>}, {pipeline_mode = #tpu.pipeline_mode<synchronous>, transform_indices = @transform_3, window_bounds = array<i64: 1, 32>}, {pipeline_mode = #tpu.pipeline_mode<synchronous>, transform_indices = @transform_4, window_bounds = array<i64: 32, 32>}, {pipeline_mode = #tpu.pipeline_mode<synchronous>, transform_indices = @transform_5, window_bounds = array<i64: 1, 32>}, {pipeline_mode = #tpu.pipeline_mode<synchronous>, transform_indices = @transform_6, window_bounds = array<i64: 32, 32>}, {pipeline_mode = #tpu.pipeline_mode<synchronous>, transform_indices = @transform_7, window_bounds = array<i64: 1, 32>}, {transform_indices = @transform_8, window_bounds = array<i64: 1, 8, 32>}]} {
    %c0 = arith.constant 0 : index
    %c0_0 = arith.constant 0 : index
    %c0_1 = arith.constant 0 : index
    %0 = vector.load %arg2[%c0, %c0_0, %c0_1] : memref<1x8x32xf32, #tpu.memory_space<vmem>>, vector<1x8x32xf32>
    %1 = vector.shape_cast %0 : vector<1x8x32xf32> to vector<8x32xf32>
    %2 = arith.truncf %1 : vector<8x32xf32> to vector<8x32xbf16>
    %c0_2 = arith.constant 0 : index
    %c0_3 = arith.constant 0 : index
    %c0_4 = arith.constant 0 : index
    %3 = vector.load %arg3[%c0_2, %c0_3, %c0_4] : memref<1x8x32xf32, #tpu.memory_space<vmem>>, vector<1x8x32xf32>
    %4 = vector.shape_cast %3 : vector<1x8x32xf32> to vector<8x32xf32>
    %5 = arith.truncf %4 : vector<8x32xf32> to vector<8x32xbf16>
    %c0_5 = arith.constant 0 : index
    %c0_6 = arith.constant 0 : index
    %6 = vector.load %arg4[%c0_5, %c0_6] : memref<32x32xbf16, #tpu.memory_space<vmem>>, vector<32x32xbf16>
    %cst = arith.constant dense<0.000000e+00> : vector<8x32xf32>
    %7 = tpu.matmul %2, %6, %cst {dimension_numbers = #tpu.dot_dimension_numbers<[1], [0], [0], [1], [0, 0, 1, 1], [], []>} : vector<8x32xbf16>, vector<32x32xbf16>, vector<8x32xf32> -> vector<8x32xf32>
    %c0_7 = arith.constant 0 : index
    %c0_8 = arith.constant 0 : index
    %8 = vector.load %arg5[%c0_7, %c0_8] : memref<1x32xf32, #tpu.memory_space<vmem>>, vector<1x32xf32>
    %9 = vector.shape_cast %8 : vector<1x32xf32> to vector<32xf32>
    %10 = vector.shape_cast %9 : vector<32xf32> to vector<1x32xf32>
    %11 = vector.broadcast %10 : vector<1x32xf32> to vector<8x32xf32>
    %12 = arith.addf %7, %11 : vector<8x32xf32>
    %cst_9 = arith.constant 2.500000e-01 : f32
    %13 = vector.broadcast %cst_9 : f32 to vector<8x32xf32>
    %14 = arith.mulf %12, %13 : vector<8x32xf32>
    %c0_10 = arith.constant 0 : index
    %c0_11 = arith.constant 0 : index
    %15 = vector.load %arg6[%c0_10, %c0_11] : memref<32x32xbf16, #tpu.memory_space<vmem>>, vector<32x32xbf16>
    %cst_12 = arith.constant dense<0.000000e+00> : vector<8x32xf32>
    %16 = tpu.matmul %5, %15, %cst_12 {dimension_numbers = #tpu.dot_dimension_numbers<[1], [0], [0], [1], [0, 0, 1, 1], [], []>} : vector<8x32xbf16>, vector<32x32xbf16>, vector<8x32xf32> -> vector<8x32xf32>
    %c0_13 = arith.constant 0 : index
    %c0_14 = arith.constant 0 : index
    %17 = vector.load %arg7[%c0_13, %c0_14] : memref<1x32xf32, #tpu.memory_space<vmem>>, vector<1x32xf32>
    %18 = vector.shape_cast %17 : vector<1x32xf32> to vector<32xf32>
    %19 = vector.shape_cast %18 : vector<32xf32> to vector<1x32xf32>
    %20 = vector.broadcast %19 : vector<1x32xf32> to vector<8x32xf32>
    %21 = arith.addf %16, %20 : vector<8x32xf32>
    %c0_15 = arith.constant 0 : index
    %c0_16 = arith.constant 0 : index
    %22 = vector.load %arg8[%c0_15, %c0_16] : memref<32x32xbf16, #tpu.memory_space<vmem>>, vector<32x32xbf16>
    %cst_17 = arith.constant dense<0.000000e+00> : vector<8x32xf32>
    %23 = tpu.matmul %5, %22, %cst_17 {dimension_numbers = #tpu.dot_dimension_numbers<[1], [0], [0], [1], [0, 0, 1, 1], [], []>} : vector<8x32xbf16>, vector<32x32xbf16>, vector<8x32xf32> -> vector<8x32xf32>
    %c0_18 = arith.constant 0 : index
    %c0_19 = arith.constant 0 : index
    %24 = vector.load %arg9[%c0_18, %c0_19] : memref<1x32xf32, #tpu.memory_space<vmem>>, vector<1x32xf32>
    %25 = vector.shape_cast %24 : vector<1x32xf32> to vector<32xf32>
    %26 = vector.shape_cast %25 : vector<32xf32> to vector<1x32xf32>
    %27 = vector.broadcast %26 : vector<1x32xf32> to vector<8x32xf32>
    %28 = arith.addf %23, %27 : vector<8x32xf32>
    %29 = vector.extract_strided_slice %14 {offsets = [0, 0], sizes = [8, 16], strides = [1, 1]} : vector<8x32xf32> to vector<8x16xf32>
    %30 = vector.extract_strided_slice %14 {offsets = [0, 16], sizes = [8, 16], strides = [1, 1]} : vector<8x32xf32> to vector<8x16xf32>
    %31 = vector.shape_cast %29 : vector<8x16xf32> to vector<1x8x16xf32>
    %32 = vector.shape_cast %30 : vector<8x16xf32> to vector<1x8x16xf32>
    %33 = tpu.concatenate %31, %32 in 0 : vector<1x8x16xf32>, vector<1x8x16xf32> -> vector<2x8x16xf32>
    %34 = arith.truncf %33 : vector<2x8x16xf32> to vector<2x8x16xbf16>
    %35 = vector.extract_strided_slice %21 {offsets = [0, 0], sizes = [8, 16], strides = [1, 1]} : vector<8x32xf32> to vector<8x16xf32>
    %36 = vector.extract_strided_slice %21 {offsets = [0, 16], sizes = [8, 16], strides = [1, 1]} : vector<8x32xf32> to vector<8x16xf32>
    %37 = vector.shape_cast %35 : vector<8x16xf32> to vector<1x8x16xf32>
    %38 = vector.shape_cast %36 : vector<8x16xf32> to vector<1x8x16xf32>
    %39 = tpu.concatenate %37, %38 in 0 : vector<1x8x16xf32>, vector<1x8x16xf32> -> vector<2x8x16xf32>
    %40 = arith.truncf %39 : vector<2x8x16xf32> to vector<2x8x16xbf16>
    %41 = vector.extract_strided_slice %28 {offsets = [0, 0], sizes = [8, 16], strides = [1, 1]} : vector<8x32xf32> to vector<8x16xf32>
    %42 = vector.extract_strided_slice %28 {offsets = [0, 16], sizes = [8, 16], strides = [1, 1]} : vector<8x32xf32> to vector<8x16xf32>
    %43 = vector.shape_cast %41 : vector<8x16xf32> to vector<1x8x16xf32>
    %44 = vector.shape_cast %42 : vector<8x16xf32> to vector<1x8x16xf32>
    %45 = tpu.concatenate %43, %44 in 0 : vector<1x8x16xf32>, vector<1x8x16xf32> -> vector<2x8x16xf32>
    %46 = arith.truncf %45 : vector<2x8x16xf32> to vector<2x8x16xbf16>
    %cst_20 = arith.constant dense<0.000000e+00> : vector<2x8x8xf32>
    %47 = tpu.matmul %34, %40, %cst_20 {dimension_numbers = #tpu.dot_dimension_numbers<[2], [2], [1], [1], [0, 0, 0, 1, 1, 1], [0], [0]>} : vector<2x8x16xbf16>, vector<2x8x16xbf16>, vector<2x8x8xf32> -> vector<2x8x8xf32>
    %cst_21 = arith.constant dense<0xFF800000> : vector<2x8xf32>
    %48 = vector.multi_reduction <maximumf>, %47, %cst_21 [2] : vector<2x8x8xf32> to vector<2x8xf32>
    %49 = vector.shape_cast %48 : vector<2x8xf32> to vector<2x8x1xf32>
    %50 = vector.broadcast %49 : vector<2x8x1xf32> to vector<2x8x8xf32>
    %51 = arith.subf %47, %50 : vector<2x8x8xf32>
    %52 = math.exp %51 : vector<2x8x8xf32>
    %cst_22 = arith.constant dense<0.000000e+00> : vector<2x8xf32>
    %53 = vector.multi_reduction <add>, %52, %cst_22 [2] : vector<2x8x8xf32> to vector<2x8xf32>
    %54 = vector.shape_cast %53 : vector<2x8xf32> to vector<2x8x1xf32>
    %55 = tpu.reciprocal %54 {approx = true} : vector<2x8x1xf32> -> vector<2x8x1xf32>
    %56 = vector.broadcast %55 : vector<2x8x1xf32> to vector<2x8x8xf32>
    %57 = arith.mulf %52, %56 : vector<2x8x8xf32>
    %58 = arith.truncf %57 : vector<2x8x8xf32> to vector<2x8x8xbf16>
    %cst_23 = arith.constant dense<0.000000e+00> : vector<2x8x16xf32>
    %59 = tpu.matmul %58, %46, %cst_23 {dimension_numbers = #tpu.dot_dimension_numbers<[2], [1], [1], [2], [0, 0, 0, 1, 1, 2], [0], [0]>} : vector<2x8x8xbf16>, vector<2x8x16xbf16>, vector<2x8x16xf32> -> vector<2x8x16xf32>
    %60 = vector.extract_strided_slice %59 {offsets = [0, 0, 0], sizes = [1, 8, 16], strides = [1, 1, 1]} : vector<2x8x16xf32> to vector<1x8x16xf32>
    %61 = vector.shape_cast %60 : vector<1x8x16xf32> to vector<8x16xf32>
    %62 = vector.extract_strided_slice %59 {offsets = [1, 0, 0], sizes = [1, 8, 16], strides = [1, 1, 1]} : vector<2x8x16xf32> to vector<1x8x16xf32>
    %63 = vector.shape_cast %62 : vector<1x8x16xf32> to vector<8x16xf32>
    %64 = tpu.concatenate %61, %63 in 1 : vector<8x16xf32>, vector<8x16xf32> -> vector<8x32xf32>
    %c0_24 = arith.constant 0 : index
    %c0_25 = arith.constant 0 : index
    %c0_26 = arith.constant 0 : index
    %65 = vector.load %arg10[%c0_24, %c0_25, %c0_26] : memref<1x8x32xf32, #tpu.memory_space<vmem>>, vector<1x8x32xf32>
    %66 = vector.shape_cast %65 : vector<1x8x32xf32> to vector<8x32xf32>
    %67 = vector.shape_cast %64 : vector<8x32xf32> to vector<1x8x32xf32>
    tpu.vector_store %arg10[%c0_24, %c0_25, %c0_26], %67 {strides = array<i32>} : memref<1x8x32xf32, #tpu.memory_space<vmem>>, vector<1x8x32xf32>,
    return
  }
  func.func @transform_0(%arg0: i32, %arg1: i32) -> (i32, i32, i32) {
    %c0_i32 = arith.constant 0 : i32
    %c0_i32_0 = arith.constant 0 : i32
    return %arg0, %arg1, %c0_i32 : i32, i32, i32
  }
  func.func @transform_1(%arg0: i32, %arg1: i32) -> (i32, i32, i32) {
    %c0_i32 = arith.constant 0 : i32
    %c0_i32_0 = arith.constant 0 : i32
    %c0_i32_1 = arith.constant 0 : i32
    return %arg0, %c0_i32, %c0_i32_0 : i32, i32, i32
  }
  func.func @transform_2(%arg0: i32, %arg1: i32) -> (i32, i32) {
    %c0_i32 = arith.constant 0 : i32
    %c0_i32_0 = arith.constant 0 : i32
    %c0_i32_1 = arith.constant 0 : i32
    return %c0_i32, %c0_i32_0 : i32, i32
  }
  func.func @transform_3(%arg0: i32, %arg1: i32) -> (i32, i32) {
    %c0_i32 = arith.constant 0 : i32
    %c0_i32_0 = arith.constant 0 : i32
    %c0_i32_1 = arith.constant 0 : i32
    return %c0_i32, %c0_i32_0 : i32, i32
  }
  func.func @transform_4(%arg0: i32, %arg1: i32) -> (i32, i32) {
    %c0_i32 = arith.constant 0 : i32
    %c0_i32_0 = arith.constant 0 : i32
    %c0_i32_1 = arith.constant 0 : i32
    return %c0_i32, %c0_i32_0 : i32, i32
  }
  func.func @transform_5(%arg0: i32, %arg1: i32) -> (i32, i32) {
    %c0_i32 = arith.constant 0 : i32
    %c0_i32_0 = arith.constant 0 : i32
    %c0_i32_1 = arith.constant 0 : i32
    return %c0_i32, %c0_i32_0 : i32, i32
  }
  func.func @transform_6(%arg0: i32, %arg1: i32) -> (i32, i32) {
    %c0_i32 = arith.constant 0 : i32
    %c0_i32_0 = arith.constant 0 : i32
    %c0_i32_1 = arith.constant 0 : i32
    return %c0_i32, %c0_i32_0 : i32, i32
  }
  func.func @transform_7(%arg0: i32, %arg1: i32) -> (i32, i32) {
    %c0_i32 = arith.constant 0 : i32
    %c0_i32_0 = arith.constant 0 : i32
    %c0_i32_1 = arith.constant 0 : i32
    return %c0_i32, %c0_i32_0 : i32, i32
  }
  func.func @transform_8(%arg0: i32, %arg1: i32) -> (i32, i32, i32) {
    %c0_i32 = arith.constant 0 : i32
    %c0_i32_0 = arith.constant 0 : i32
    return %arg0, %arg1, %c0_i32 : i32, i32, i32
  }
}

</mosaic_0001>

<bundles_post_ra>
// kernel: tpu_custom_call.1
= control target key start
LH: loop header
LB: loop body
LE: loop exit
PB: predicated region body
PF: predicated region fallthrough
CT: control target
= control target key end

     0   :  { %s1491_s0 = inlined_call_operand.hbm [shape: f32[2,8,32], index: 0, kind: input, shape index: {}]   ;;  %s1492_s1 = inlined_call_operand.hbm [shape: f32[2,8,32], index: 1, kind: input, shape index: {}]   ;;  %s1493_s2 = inlined_call_operand.hbm [shape: bf16[32,32], index: 2, kind: input, shape index: {}]   ;;  %s1494_s3 = inlined_call_operand.vmem [shape: f32[1,32], index: 3, kind: input, shape index: {}]   ;;  %s1495_s4 = inlined_call_operand.hbm [shape: bf16[32,32], index: 4, kind: input, shape index: {}]   ;;  %s1496_s5 = inlined_call_operand.vmem [shape: f32[1,32], index: 5, kind: input, shape index: {}]   ;;  %s1497_s6 = inlined_call_operand.hbm [shape: bf16[32,32], index: 6, kind: input, shape index: {}]   ;;  %s1498_s7 = inlined_call_operand.vmem [shape: f32[1,32], index: 7, kind: input, shape index: {}]   ;;  %s1499_s8 = inlined_call_operand.hbm [shape: f32[2,8,32], index: 8, kind: output, shape index: {}]  }
   0x1   :  { %1505 = sst [smem:[#allocation23_spill]] %s1493_s2 }
   0x2   :  { %1506 = sst [smem:[#allocation24_spill]] %s1495_s4 }
   0x3   :  { %1507 = sst [smem:[#allocation25_spill]] %s1497_s6 }
   0x4   :  { %13 = vsyncpa [#allocation3], 0 }
   0x5   :  { %15 = vsyncpa [#allocation3 + $0x1], 0 }
   0x6   :  { %16 = vsyncpa [#allocation6], 0 }
   0x7   :  { %18 = vsyncpa [#allocation6 + $0x1], 0 }
   0x8   :  { %19 = vsyncpa [#allocation9], 0 }
   0x9   :  { %20 = vsyncpa [#allocation4], 0 }
   0xa   :  { %22 = vsyncpa [#allocation4 + $0x1], 0  ;;  %s1285_s27 = smov 0   ;;  %s1287_s28 = smov 0  }
   0xb   :  { %s1289_s29 = smov 0   ;;  %s1291_s30 = smov 0  }
   0xc   :  { %s1293_s9 = smov 0   ;;  %s1295_s10 = smov 0  }
   0xd LB: > { %1508 = sst [smem:[#allocation17_spill]] %s1211_s27  ;;  %s1316_s11 = sadd.s32 4294967295, %s1231_s10   ;;  %s1231_s10 = sphi %s1295_s10, %s28_s10   ;;  %s1227_s9 = sphi %s1293_s9, %s1528_s9   ;;  %s1223_s30 = sphi %s1291_s30, %s1527_s30   ;;  %s1219_s29 = sphi %s1289_s29, %s1526_s29   ;;  %s1215_s28 = sphi %s1287_s28, %s1530_s28   ;;  %s1211_s27 = sphi %s1285_s27, %s1529_s27  }
   0xe   : > { %1509 = sst [smem:[#allocation18_spill]] %s1219_s29  ;;  %p817_p0 = scmp.ge.s32.totalorder %s1231_s10, 1 }
   0xf   : > { %1510 = sst [smem:[#allocation19_spill]] %s1227_s9  ;;  %p63_p1 = scmp.eq.s32.totalorder %s1316_s11, 0 }
  0x10   : > { %p253_p2 = scmp.lt.s32.totalorder %s1231_s10, 3  ;;  %s1511_s2 = sld [smem:[#allocation23_spill]] }
  0x11   : > { %s1233_s16 = smov [#allocation7]   ;;  %p821_p6 = scmp.ge.s32.totalorder %s1231_s10, 2 }
  0x12   : > { %p1324_p3 = pnand %p817_p0, %p253_p2  ;;  %s266_s17 = sshll.u32 %s1233_s16, 4  ;;  %s267_s17 = int_to_ptr.vmem [resolvable:$true] %s266_s17 }
  0x13   : > { %s1514_s4 = sld [smem:[#allocation24_spill]]  ;;  %s1234_s22 = smov 64  }
  0x14   : > { %p892_p4 = pneg %p1324_p3  ;;  %s1235_s23 = smov 4  }
  0x15   : > { %s1236_s24 = smov [#allocation8]   ;;  %s1515_s6 = sld [smem:[#allocation25_spill]] }
  0x16   : > { %s264_s14 = sshll.u32 %s1511_s2, 4  ;;  %p1332_p5 = pnand %p892_p4, %p63_p1  ;;  %s265_s14 = int_to_ptr.hbm [resolvable:$true] %s264_s14 }
  0x17   : > { %s283_s25 = sshll.u32 %s1236_s24, 4  ;;  %s1237_s16 = smov [#allocation10]   ;;  %s284_s25 = int_to_ptr.vmem [resolvable:$true] %s283_s25 }
  0x18   : > { %895 = dma.hbm_to_vmem [thread:$0]  (!%p1332_p5), %s265_s14, 256, %s267_s17, [#allocation6], %s1234_s22, %s1234_s22, %s1235_s23  }
  0x19   : > { %s281_s21 = sshll.u32 %s1514_s4, 4  ;;  %s300_s19 = sshll.u32 %s1237_s16, 4  ;;  %s282_s21 = int_to_ptr.hbm [resolvable:$true] %s281_s21  ;;  %s301_s19 = int_to_ptr.vmem [resolvable:$true] %s300_s19 }
  0x1a   : > { %898 = dma.hbm_to_vmem [thread:$0]  (!%p1332_p5), %s282_s21, 256, %s284_s25, [#allocation9], %s1234_s22, %s1234_s22, %s1235_s23  }
  0x1b   : > { %s298_s13 = sshll.u32 %s1515_s6, 4  ;;  %s816_s14 = sadd.s32 4294967294, %s1231_s10   ;;  %s299_s13 = int_to_ptr.hbm [resolvable:$true] %s298_s13 }
  0x1c   : > { %901 = dma.hbm_to_vmem [thread:$0]  (!%p1332_p5), %s299_s13, 256, %s301_s19, [#allocation9], %s1234_s22, %s1234_s22, %s1235_s23  }
  0x1d   : > { %s40_s17 = sadd.s32 1, %s1227_s9  ;;  %s49_s20 = sadd.s32 1, %s1219_s29 }
  0x1e   : > { %p42_p7 = scmp.ge.s32.totalorder %s40_s17, 2  ;;  %p56_p8 = scmp.ne.s32.totalorder %s1219_s29, %s1215_s28 }
  0x1f   : > { %p57_p9 = scmp.eq.s32.totalorder %s1231_s10, 0  ;;  %p62_p10 = scmp.ne.s32.totalorder %s1215_s28, %s1211_s27 }
  0x20   : > { %s1532_s17 = smov (%p42_p7, %s40_s17), 0  ;;  %p240_p13 = scmp.eq.s32.totalorder %s1316_s11, 1 }
  0x21   : > { %1516 = sst [smem:[#allocation20_spill]] %s1532_s17  ;;  %p1359_p11 = por %p57_p9, %p56_p8 }
  0x22   : > { %p1365_p12 = por %p63_p1, %p62_p10  ;;  %s44_s22 = ssub.s32 %s1227_s9, %s1532_s17 }
  0x23   : > { %p47_p0 = scmp.eq.s32.totalorder %s44_s22, 0  ;;  %p246_p2 = scmp.eq.s32.totalorder %s816_s14, 1 }
  0x24   : > { %p1372_p4 = por %p240_p13, %p56_p8  ;;  %p916_p5 = scmp.lt.s32.totalorder %s1231_s10, 2 }
  0x25   : > { %s1378_s24 = scalar_select %p47_p0, %s1219_s29, %s49_s20  }
  0x26   : > { %p1380_p7 = por %p246_p2, %p62_p10  ;;  %s317_s26 = sand.u32 1, %s1219_s29  }
  0x27   : > { %1520 = sst [smem:[#allocation21_spill]] %s1378_s24  ;;  %s822_s12 = sshll.u32 %s317_s26, 3 }
  0x28   : > { %s1521_s25 = scalar_select %p1380_p7, 1, 0 }
  0x29   : > { %s823_s13 = sshll.u32 %s1227_s9, 3  ;;  %s321_s14 = scalar_lea.vmem [#allocation2], %s822_s12 }
  0x2a   : > { %1522 = sst [smem:[#allocation22_spill]] %s1521_s25  ;;  %s326_s22 = scalar_lea.hbm %s1491_s0, %s823_s13 }
  0x2b   : > { %s330_s2 = sshll.u32 %s321_s14, 4  ;;  %s328_s4 = sshll.u32 %s326_s22, 4  ;;  %s331_s2 = int_to_ptr.vmem [resolvable:$true] %s330_s2  ;;  %s329_s4 = int_to_ptr.hbm [resolvable:$true] %s328_s4 }
  0x2c   : > { %p903_p8 = pnand %p916_p5, %p1359_p11  ;;  %s345_s17 = scalar_lea.hbm %s1492_s1, %s823_s13 }
  0x2d   : > { %s337_s24 = sand.u32 1, %s1231_s10   ;;  %s318_s25 = scalar_lea.sflag [#allocation3], %s317_s26 }
  0x2e   : > { %905 = dma.hbm_to_vmem [thread:$0]  (!%p903_p8), %s329_s4, 128, %s331_s2, %s318_s25  }
  0x2f   : > { %s347_s29 = sshll.u32 %s345_s17, 4  ;;  %s341_s9 = scalar_lea.vmem [#allocation5], %s822_s12  ;;  %s348_s29 = int_to_ptr.hbm [resolvable:$true] %s347_s29 }
  0x30   : > { %s349_s27 = sshll.u32 %s341_s9, 4  ;;  %s338_s16 = scalar_lea.sflag [#allocation6], %s337_s24  ;;  %s350_s27 = int_to_ptr.vmem [resolvable:$true] %s349_s27 }
  0x31   : > { %908 = dma.hbm_to_vmem [thread:$0]  (!%p903_p8), %s348_s29, 128, %s350_s27, %s338_s16  }
  0x32   : > { %358 = sbr.rel (%p1324_p3) target bundleno = 960 (0x3c0), region = 52  ;;  %s1398_s21 = sand.u32 (!%p1324_p3), 1, %s1215_s28  }
  0x33   : > { %s1401_s6 = sshll.u32 (!%p1324_p3), %s1398_s21, 3  ;;  %s361_s2 = scalar_lea.sflag (!%p1324_p3), [#allocation3], %s1398_s21 }
  0x34   : > { %s364_s4 = scalar_lea.vmem (!%p1324_p3), [#allocation2], %s1401_s6 }
  0x37   : > { %1190 = dma.done.wait (%p1365_p12), %s361_s2, 128  }
  0x38   : > { %1192 = vsyncadd (%p1365_p12), %s361_s2, 4294967168  ;;  %s370_s27 = sand.u32 1, %s1316_s11   ;;  %s374_s9 = scalar_lea.vmem [#allocation5], %s1401_s6 }
  0x39   : > { %s371_s29 = scalar_lea.sflag [#allocation6], %s370_s27 }
  0x3a   : > { %1194 = dma.done.wait (%p1365_p12), %s371_s29, 128  }
  0x3b   : > { %1196 = vsyncadd (%p1365_p12), %s371_s29, 4294967168 }
  0x3c   : > { %1198 = dma.done.wait (%p63_p1), [#allocation6], 256  }
  0x3d   : > { %1200 = vsyncadd (%p63_p1), [#allocation6], 4294967040 }
  0x3e   : > { %1202 = dma.done.wait (%p63_p1), [#allocation9], 512  }
  0x3f   : > { %1204 = vsyncadd (%p63_p1), [#allocation9], 4294966784  ;;  %v869_v0 = vld [vmem:[#allocation7 + $0x8] sm:$0xff]  ;;  %v871_v1 = vld [vmem:[#allocation8 + $0x8] sm:$0xff]  ;;  %vm453_vm0 = vcmask 261120   ;;  %vm558_vm1 = vcmask 130048  }
  0x40   : > { %v868_v2 = vld [vmem:[#allocation7] sm:$0xff]  ;;  %v870_v3 = vld [vmem:[#allocation8] sm:$0xff]  ;;  %463 = vmatpush.bf16.msra.mxu0 %v869_v0  ;;  %500 = vmatpush.bf16.msra.mxu1 %v871_v1  ;;  %s1238_s24 = smov 112   ;;  %v873_v27 = vld [vmem:[#allocation10 + $0x8] sm:$0xff]  ;;  %vm597_vm2 = vcmask 64512   ;;  %vm625_vm3 = vcmask 1043456  }
  0x41   : > { %v429_v4 = vld [vmem:[%s364_s4] sm:$0xff]  ;;  %v431_v5 = vld [vmem:[%s374_s9] sm:$0xff]  ;;  %533 = vmatpush.bf16.msra.mxu2 %v873_v27  ;;  %s1239_s12 = smov 16   ;;  %s865_s13 = sshll.u32 %s1223_s30, 3 }
  0x42   : > { %v430_v6 = vpack.c.bf16 %v429_v4, %v429_v4  ;;  %v432_v7 = vpack.c.bf16 %v431_v5, %v431_v5  ;;  %v976_v8 = vld [vmem:[%s1494_s3] ss:$0 sm:$0xff]  ;;  %s679_s14 = scalar_lea.hbm %s1499_s8, %s865_s13  ;;  %s427_s20 = scalar_lea.vmem [#allocation11], %s1401_s6 }
  0x43   : > { %v977_v9 = vld [vmem:[%s1496_s5] ss:$0 sm:$0xff]  ;;  %s681_s16 = sshll.u32 %s427_s20, 4  ;;  %s683_s2 = sshll.u32 %s679_s14, 4  ;;  %s682_s16 = int_to_ptr.vmem [resolvable:$true] %s681_s16  ;;  %s684_s2 = int_to_ptr.hbm [resolvable:$true] %s683_s2 }
  0x44   : > { %464 = vmatpush.bf16.msra.mxu0 %v868_v2  ;;  %501 = vmatpush.bf16.msra.mxu1 %v870_v3  ;;  %v872_v28 = vld [vmem:[#allocation10] sm:$0xff]  ;;  %s668_s4 = scalar_lea.sflag [#allocation4], %s1398_s21  ;;  %s1151_s27 = sshra.s32 %s684_s2, 4  ;;  %s1152_s27 = int_to_ptr.hbm [resolvable:$true] %s1151_s27 }
  0x45   : > { %534 = vmatpush.bf16.msra.mxu2 %v872_v28  ;;  %v978_v33 = vld [vmem:[%s1498_s7] ss:$0 sm:$0xff]  ;;  %s1153_s29 = scalar_lea.hbm %s1152_s27, 8  ;;  %s1157_s6 = scalar_lea.hbm %s1499_s8, 16 }
  0x46   : > { %p1154_p1 = scmp.ne.s32.totalorder %s1152_s27, %s1153_s29  ;;  %p1158_p10 = scmp.lt.s32.totalorder %s1152_s27, %s1499_s8 }
  0x47   : > { %841 = vmatmul.msk.bf16.vlgmr.msra.gmra.mxu0 %vm453_vm0, %v430_v6  ;;  %850 = vmatmul.msk.bf16.vlgmr.msra.gmra.mxu1 %vm453_vm0, %v432_v7  ;;  %p1159_p11 = scmp.lt.s32.totalorder %s1157_s6, %s1153_s29 }
  0x48   : > { %859 = vmatmul.msk.bf16.vlgmr.msra.gmra.mxu2 %vm453_vm0, %v432_v7  ;;  %p1155_p3 = pnand %p1154_p1, %p1372_p4 }
  0x49   : > { %p1160_p12 = por %p1159_p11, %p1158_p10 }
  0x4a   : > { %p1156_p9 = pneg %p1155_p3 }
  0x4c   : > { %p1161_p13 = pnand %p1160_p12, %p1156_p9 }
  0xc4   : > { %v466_v10 = vpop.f32.mrf.mxu0  ;;  %v503_v11 = vpop.f32.mrf.mxu1 }
  0xc5   : > { %v467_v12 = vadd.f32 %v976_v8, %v466_v10  ;;  %v504_v13 = vadd.f32 %v977_v9, %v503_v11 }
  0xc7   : > { %547 = vrot.lane.b32.xlu0 %v504_v13, %s1238_s24  ;;  %v550_v14 = vpack.c.bf16 %v504_v13, %v504_v13  ;;  %v470_v15 = vmul.f32 0.25, %v467_v12 }
  0xc9   : > { %v563_v16 = vsel %vm558_vm1, %v550_v14, 0  ;;  %v544_v19 = vpack.c.bf16 %v470_v15, %v470_v15 }
  0xca   : > { %572 = vmatpush.bf16.xpose.msra.mxu3 %v563_v16 }
  0xcb   : > { %v536_v36 = vpop.f32.mrf.mxu2 }
  0xcc   : > { %v468_v17 = vpop.f32.mrf.mxu0  ;;  %v505_v18 = vpop.f32.mrf.mxu1  ;;  %v537_v37 = vadd.f32 %v978_v33, %v536_v36 }
  0xce   : > { %v556_v39 = vpack.c.bf16 %v537_v37, %v537_v37 }
  0xcf   : > { %541 = vrot.lane.b32.xlu0 %v470_v15, %s1238_s24 }
  0xd0   : > { %v627_v40 = vsel %vm625_vm3, %v556_v39, 0 }
  0xd1   : > { %860 = vmatmul.msk.bf16.vlgmr.msra.gmra.mxu3 %vm558_vm1, %v544_v19  ;;  %636 = vmatpush.bf16.msrb.mxu1 %v627_v40 }
  0xd3   : > { %v538_v43 = vpop.f32.mrf.mxu2 }
 0x139   : > { %v548_v20 = vpop.permute.xlu0 %547 }
 0x13a   : > { %v551_v21 = vpack.c.bf16 %v548_v20, %v548_v20 }
 0x13c   : > { %v582_v22 = vsel %vm558_vm1, %v551_v21, 0 }
 0x13d   : > { %591 = vmatpush.bf16.xpose.msrb.mxu0 %v582_v22 }
 0x141   : > { %v542_v23 = vpop.permute.xlu0 %541 }
 0x142   : > { %v545_v24 = vpack.c.bf16 %v542_v23, %v542_v23 }
 0x144   : > { %861 = vmatmul.msk.bf16.vlgmr.msrb.gmra.mxu0 %vm558_vm1, %v545_v24 }
 0x154   : > { %v574_v25 = vpop.f32.mrf.mxu3 }
 0x155   : > { %v598_v32 = vsel %vm597_vm2, %v574_v25, -inf }
 0x15c   : > { %v576_v26 = vpop.f32.mrf.mxu3 }
 0x1c1   : > { %v593_v29 = vpop.f32.mrf.mxu0 }
 0x1c2   : > { %v601_v30 = vsel %vm597_vm2, %v593_v29, -inf }
 0x1c3   : > { %602 = vmax.xlane.f32.xlu1 %v601_v30 }
 0x1c9   : > { %v595_v31 = vpop.f32.mrf.mxu0 }
 0x1cb   : > { %599 = vmax.xlane.f32.xlu1 %v598_v32 }
 0x236   : > { %v603_v34 = vpop.xlane.xlu1 %602 }
 0x237   : > { %v605_v35 = vsub.f32 %v593_v29, %v603_v34 }
 0x239   : > { %v608_v38 = vmul.f32 1.442695, %v605_v35 }
 0x23b   : > { %979 = vpow2.f32 %v608_v38 }
 0x23e   : > { %v600_v41 = vpop.xlane.xlu1 %599 }
 0x23f   : > { %v604_v42 = vsub.f32 %v574_v25, %v600_v41 }
 0x241   : > { %v980_v44 = vpop.eup %979  ;;  %v606_v45 = vmul.f32 1.442695, %v604_v42 }
 0x242   : > { %v613_v46 = vsel %vm597_vm2, %v980_v44, 0.0 }
 0x243   : > { %981 = vpow2.f32 %v606_v45  ;;  %614 = vadd.xlane.f32.xlu2 %v613_v46 }
 0x249   : > { %v982_v47 = vpop.eup %981 }
 0x24a   : > { %v610_v48 = vsel %vm597_vm2, %v982_v47, 0.0 }
 0x24b   : > { %611 = vadd.xlane.f32.xlu0 %v610_v48 }
 0x25b   : > { %553 = vrot.lane.b32.xlu2 %v537_v37, %s1238_s24 }
 0x2b6   : > { %v615_v49 = vpop.xlane.xlu2 %614 }
 0x2b7   : > { %983 = vrcp.f32 %v615_v49 }
 0x2bd   : > { %v984_v50 = vpop.eup %983 }
 0x2be   : > { %v554_v51 = vpop.permute.xlu2 %553  ;;  %v612_v52 = vpop.xlane.xlu0 %611  ;;  %v619_v53 = vmul.f32 %v984_v50, %v980_v44 }
 0x2bf   : > { %v557_v54 = vpack.c.bf16 %v554_v51, %v554_v51  ;;  %985 = vrcp.f32 %v612_v52 }
 0x2c0   : > { %v621_v56 = vpack.c.bf16 %v619_v53, %v619_v53 }
 0x2c1   : > { %v646_v55 = vsel %vm625_vm3, %v557_v54, 0 }
 0x2c2   : > { %655 = vmatpush.bf16.msrb.mxu2 %v646_v55 }
 0x2c5   : > { %v986_v57 = vpop.eup %985  ;;  %863 = vmatmul.msk.bf16.vlgmr.msrb.gmra.mxu2 %vm597_vm2, %v621_v56 }
 0x2c6   : > { %v618_v58 = vmul.f32 %v986_v57, %v982_v47 }
 0x2c8   : > { %v620_v59 = vpack.c.bf16 %v618_v58, %v618_v58 }
 0x2ca   : > { %862 = vmatmul.msk.bf16.vlgmr.msrb.gmra.mxu1 %vm597_vm2, %v620_v59 }
 0x347   : > { %v638_v60 = vpop.f32.mrf.mxu1 }
 0x348   : > { %v657_v61 = vpop.f32.mrf.mxu2 }
 0x349   : > { %662 = vrot.lane.b32.xlu1 %v657_v61, %s1239_s12 }
 0x34f   : > { %v640_v62 = vpop.f32.mrf.mxu1 }
 0x350   : > { %v659_v63 = vpop.f32.mrf.mxu2 }
 0x3bb   : > { %v663_v0 = vpop.permute.xlu1 %662 }
 0x3bc   : > { %v665_v1 = vsel %vm558_vm1, %v638_v60, %v663_v0 }
 0x3bd   : > { %666 = vst.msk [vmem:[%s427_s20] sm:$0xff] %vm453_vm0, %v665_v1 }
 0x3be   : > { %1164 = shalt.err (!%p1161_p13)
}
 0x3bf   : > { %890 = dma.vmem_to_hbm [thread:$0]  (%p1372_p4), %s682_s16, 128, %s684_s2, %s668_s4  }
 0x3c0 PF: > { %s1523_s21 = sld [smem:[#allocation17_spill]]  ;;  %p910_p0 = pnand %p821_p6, %p1380_p7 }
 0x3c2   : > { %p911_p2 = pneg %p910_p0 }
 0x3c6   : > { %s695_s18 = sand.u32 1, %s1523_s21  }
 0x3c7   : > { %s696_s24 = scalar_lea.sflag [#allocation4], %s695_s18 }
 0x3c8   : > { %1206 = dma.done.wait (%p911_p2), %s696_s24, 128  }
 0x3c9   : > { %1208 = vsyncadd (%p911_p2), %s696_s24, 4294967168  ;;  %s28_s10 = sadd.s32 1, %s1231_s10   ;;  %s1525_s25 = sld [smem:[#allocation18_spill]] }
 0x3ca   : > { %p25_p5 = scmp.ge.s32.totalorder %s28_s10, 4   ;;  %s1526_s29 = sld [smem:[#allocation21_spill]] }
 0x3cb   : > { %s1527_s30 = sld [smem:[#allocation19_spill]]  ;;  %s1529_s27 = smov %s1215_s28 }
 0x3cc   : > { %s1528_s9 = sld [smem:[#allocation20_spill]]  ;;  %27 = sbr.rel (!%p25_p5) target bundleno = 13 (0xd), region = 122 }
 0x3cf   : > { %s1530_s28 = smov %s1525_s25 }
 0x3d1   :  { %702 = vsyncpa [#allocation3], 1 }
 0x3d2   :  { %704 = vsyncpa [#allocation3 + $0x1], 1 }
 0x3d3   :  { %705 = vsyncpa [#allocation6], 1 }
 0x3d4   :  { %707 = vsyncpa [#allocation6 + $0x1], 1 }
 0x3d5   :  { %708 = vsyncpa [#allocation9], 1 }
 0x3d6   :  { %709 = vsyncpa [#allocation4], 1 }
 0x3d7   :  { %711 = vsyncpa [#allocation4 + $0x1], 1 }

</bundles_post_ra>
